<compile_context>
chip_gen: v7x
topology: tpu7x:2x2x1
jax: 0.10.0
libtpu: 0.0.40
codegen_flags: <defaults>
</compile_context>

<pallas_src>
import functools

import jax
import jax.numpy as jnp
import numpy as np
from jax.experimental import pallas as pl
from jax.experimental.pallas import tpu as pltpu


def _qnet_kernel(x_ref, w1_ref, b1_ref, w2_ref, b2_ref, o_ref):
    cdt = w1_ref.dtype  # MXU compute dtype (f32 or bf16); accumulation is f32
    x = x_ref[...].astype(cdt)

    # layer 1: x @ W1 (f32 accumulate) -> bias add + relu in f32
    h = jnp.dot(x, w1_ref[...], preferred_element_type=jnp.float32)
    h = jnp.maximum(h + b1_ref[...], 0.0)

    # layer 2: h @ W2 (f32 accumulate) -> bias add in f32
    out = jnp.dot(h.astype(cdt), w2_ref[...], preferred_element_type=jnp.float32)
    out = out + b2_ref[...]

    o_ref[...] = out.astype(o_ref.dtype)


def _round_up(n, m):
    return ((n + m - 1) // m) * m


@functools.partial(jax.jit, static_argnames=("block_b",))
def linear_qnet_forward(x, w1, b1, w2, b2, *, block_b=512):
    """x: (B, in), w1: (in, hid), b1: (1, hid), w2: (hid, out), b2: (1, out).

    Weight dtype (f32 or bf16) selects the MXU compute dtype; accumulation and
    bias/relu are always f32.  Returns (B, out) in x.dtype.
    """
    B, in_f = x.shape
    hid = w1.shape[1]
    out_f = w2.shape[1]
    assert w1.dtype == w2.dtype, "w1 and w2 must share a dtype (MXU compute dtype)"

    # Batch tiling: large tiles (overhead-bound kernel), but keep >=2 grid
    # steps when there is enough work so both v7x TensorCores participate.
    b8 = _round_up(B, 8)
    tb = min(block_b, b8)
    if tb == b8 and b8 >= 16:
        tb = _round_up(b8 // 2, 8)
    b_p = _round_up(B, tb)

    x_in = x if b_p == B else jnp.pad(x, ((0, b_p - B), (0, 0)))

    grid = (b_p // tb,)

    itemsize = x.dtype.itemsize
    cost = pl.CostEstimate(
        flops=2 * B * (in_f * hid + hid * out_f),
        transcendentals=0,
        bytes_accessed=(B * in_f + B * out_f) * itemsize
        + (w1.size + w2.size) * w1.dtype.itemsize
        + (b1.size + b2.size) * b1.dtype.itemsize,
    )

    out = pl.pallas_call(
        _qnet_kernel,
        out_shape=jax.ShapeDtypeStruct((b_p, out_f), x.dtype),
        grid=grid,
        in_specs=[
            # Only x advances with the batch grid index; feature dim unpadded
            # (block dim == full array dim is exempt from the 128 rule).
            pl.BlockSpec((tb, in_f), lambda i: (i, 0)),
            # Weights / biases: constant block index -> resident in VMEM.
            pl.BlockSpec((in_f, hid), lambda i: (0, 0)),
            pl.BlockSpec((1, hid), lambda i: (0, 0)),
            pl.BlockSpec((hid, out_f), lambda i: (0, 0)),
            pl.BlockSpec((1, out_f), lambda i: (0, 0)),
        ],
        out_specs=pl.BlockSpec((tb, out_f), lambda i: (i, 0)),
        compiler_params=pltpu.CompilerParams(
            dimension_semantics=("parallel",),
        ),
        cost_estimate=cost,
    )(x_in, w1, b1, w2, b2)

    # Padded batch rows hold relu(b1)@W2+b2 garbage -> slice them off.
    return out if b_p == B else out[:B]


def init_params(key, input_size, hidden_size, output_size, dtype=jnp.float32):
    """nn.Linear-style init (U[-1/sqrt(fan_in), +1/sqrt(fan_in)]).

    Weights are returned pre-transposed to (in, out) for the kernel's x @ W
    layout.  Pass dtype=jnp.bfloat16 to select the bf16 MXU path.
    """
    k1, k2, k3, k4 = jax.random.split(key, 4)
    lim1 = 1.0 / np.sqrt(input_size)
    lim2 = 1.0 / np.sqrt(hidden_size)
    w1 = jax.random.uniform(k1, (input_size, hidden_size), jnp.float32, -lim1, lim1)
    b1 = jax.random.uniform(k2, (1, hidden_size), jnp.float32, -lim1, lim1)
    w2 = jax.random.uniform(k3, (hidden_size, output_size), jnp.float32, -lim2, lim2)
    b2 = jax.random.uniform(k4, (1, output_size), jnp.float32, -lim2, lim2)
    return w1.astype(dtype), b1, w2.astype(dtype), b2


def reference_forward(x, w1, b1, w2, b2):
    h = jnp.maximum(x.astype(jnp.float32) @ w1.astype(jnp.float32) + b1, 0.0)
    return h @ w2.astype(jnp.float32) + b2


if __name__ == "__main__":
    input_size, hidden_size, output_size = 16, 32, 8

    key = jax.random.PRNGKey(0)
    kx, kp, kx2, kx3 = jax.random.split(key, 4)

    w1, b1, w2, b2 = init_params(kp, input_size, hidden_size, output_size)

    # --- f32 path, small batch (single grid step) -------------------------
    x = jax.random.normal(kx, (8, input_size), jnp.float32)
    out = jax.block_until_ready(linear_qnet_forward(x, w1, b1, w2, b2))
    ref = reference_forward(x, w1, b1, w2, b2)
    np.testing.assert_allclose(np.asarray(out), np.asarray(ref), rtol=1e-5, atol=1e-5)

    # --- f32 path, larger batch -> 2 grid steps (both v7x TCs) ------------
    x2 = jax.random.normal(kx2, (256, input_size), jnp.float32)
    out2 = jax.block_until_ready(linear_qnet_forward(x2, w1, b1, w2, b2))
    ref2 = reference_forward(x2, w1, b1, w2, b2)
    np.testing.assert_allclose(np.asarray(out2), np.asarray(ref2), rtol=1e-5, atol=1e-5)

    # --- ragged batch exercising the pad + slice path ----------------------
    x3 = jax.random.normal(kx3, (50, input_size), jnp.float32)
    out3 = jax.block_until_ready(linear_qnet_forward(x3, w1, b1, w2, b2))
    ref3 = reference_forward(x3, w1, b1, w2, b2)
    np.testing.assert_allclose(np.asarray(out3), np.asarray(ref3), rtol=1e-5, atol=1e-5)

    # --- bf16 MXU path (recommended on v5e): bf16 weights, f32 accumulate --
    w1_bf, w2_bf = w1.astype(jnp.bfloat16), w2.astype(jnp.bfloat16)
    out_bf = jax.block_until_ready(linear_qnet_forward(x2, w1_bf, b1, w2_bf, b2))
    np.testing.assert_allclose(np.asarray(out_bf), np.asarray(ref2), rtol=5e-2, atol=5e-2)

    print("KERNEL_OK")
</pallas_src>

<mosaic_0001>
module attributes {stable_mosaic.version = 11 : i64} {
  func.func @_qnet_kernel(%arg0: i32, %arg1: memref<8x16xf32, #tpu.memory_space<vmem>>, %arg2: memref<16x32xf32, #tpu.memory_space<vmem>>, %arg3: memref<1x32xf32, #tpu.memory_space<vmem>>, %arg4: memref<32x8xf32, #tpu.memory_space<vmem>>, %arg5: memref<1x8xf32, #tpu.memory_space<vmem>>, %arg6: memref<8x8xf32, #tpu.memory_space<vmem>>) attributes {dimension_semantics = [#tpu.dimension_semantics<parallel>], iteration_bounds = array<i64: 1>, scalar_prefetch = 0 : i64, scratch_operands = 0 : i64, tpu.core_type = #tpu.core_type<tc>, window_params = [{transform_indices = @transform_0, window_bounds = array<i64: 8, 16>}, {pipeline_mode = #tpu.pipeline_mode<synchronous>, transform_indices = @transform_1, window_bounds = array<i64: 16, 32>}, {pipeline_mode = #tpu.pipeline_mode<synchronous>, transform_indices = @transform_2, window_bounds = array<i64: 1, 32>}, {pipeline_mode = #tpu.pipeline_mode<synchronous>, transform_indices = @transform_3, window_bounds = array<i64: 32, 8>}, {pipeline_mode = #tpu.pipeline_mode<synchronous>, transform_indices = @transform_4, window_bounds = array<i64: 1, 8>}, {transform_indices = @transform_5, window_bounds = array<i64: 8, 8>}]} {
    %c0 = arith.constant 0 : index
    %c0_0 = arith.constant 0 : index
    %0 = vector.load %arg1[%c0, %c0_0] : memref<8x16xf32, #tpu.memory_space<vmem>>, vector<8x16xf32>
    %c0_1 = arith.constant 0 : index
    %c0_2 = arith.constant 0 : index
    %1 = vector.load %arg2[%c0_1, %c0_2] : memref<16x32xf32, #tpu.memory_space<vmem>>, vector<16x32xf32>
    %cst = arith.constant dense<0.000000e+00> : vector<8x32xf32>
    %2 = tpu.matmul %0, %1, %cst {dimension_numbers = #tpu.dot_dimension_numbers<[1], [0], [0], [1], [0, 0, 1, 1], [], []>} : vector<8x16xf32>, vector<16x32xf32>, vector<8x32xf32> -> vector<8x32xf32>
    %c0_3 = arith.constant 0 : index
    %c0_4 = arith.constant 0 : index
    %3 = vector.load %arg3[%c0_3, %c0_4] : memref<1x32xf32, #tpu.memory_space<vmem>>, vector<1x32xf32>
    %4 = vector.broadcast %3 : vector<1x32xf32> to vector<8x32xf32>
    %5 = arith.addf %2, %4 : vector<8x32xf32>
    %cst_5 = arith.constant 0.000000e+00 : f32
    %6 = vector.broadcast %cst_5 : f32 to vector<8x32xf32>
    %7 = arith.maximumf %5, %6 : vector<8x32xf32>
    %c0_6 = arith.constant 0 : index
    %c0_7 = arith.constant 0 : index
    %8 = vector.load %arg4[%c0_6, %c0_7] : memref<32x8xf32, #tpu.memory_space<vmem>>, vector<32x8xf32>
    %cst_8 = arith.constant dense<0.000000e+00> : vector<8x8xf32>
    %9 = tpu.matmul %7, %8, %cst_8 {dimension_numbers = #tpu.dot_dimension_numbers<[1], [0], [0], [1], [0, 0, 1, 1], [], []>} : vector<8x32xf32>, vector<32x8xf32>, vector<8x8xf32> -> vector<8x8xf32>
    %c0_9 = arith.constant 0 : index
    %c0_10 = arith.constant 0 : index
    %10 = vector.load %arg5[%c0_9, %c0_10] : memref<1x8xf32, #tpu.memory_space<vmem>>, vector<1x8xf32>
    %11 = vector.broadcast %10 : vector<1x8xf32> to vector<8x8xf32>
    %12 = arith.addf %9, %11 : vector<8x8xf32>
    %c0_11 = arith.constant 0 : index
    %c0_12 = arith.constant 0 : index
    %13 = vector.load %arg6[%c0_11, %c0_12] : memref<8x8xf32, #tpu.memory_space<vmem>>, vector<8x8xf32>
    tpu.vector_store %arg6[%c0_11, %c0_12], %12 {strides = array<i32>} : memref<8x8xf32, #tpu.memory_space<vmem>>, vector<8x8xf32>,
    return
  }
  func.func @transform_0(%arg0: i32) -> (i32, i32) {
    %c0_i32 = arith.constant 0 : i32
    %c0_i32_0 = arith.constant 0 : i32
    return %arg0, %c0_i32 : i32, i32
  }
  func.func @transform_1(%arg0: i32) -> (i32, i32) {
    %c0_i32 = arith.constant 0 : i32
    %c0_i32_0 = arith.constant 0 : i32
    %c0_i32_1 = arith.constant 0 : i32
    return %c0_i32, %c0_i32_0 : i32, i32
  }
  func.func @transform_2(%arg0: i32) -> (i32, i32) {
    %c0_i32 = arith.constant 0 : i32
    %c0_i32_0 = arith.constant 0 : i32
    %c0_i32_1 = arith.constant 0 : i32
    return %c0_i32, %c0_i32_0 : i32, i32
  }
  func.func @transform_3(%arg0: i32) -> (i32, i32) {
    %c0_i32 = arith.constant 0 : i32
    %c0_i32_0 = arith.constant 0 : i32
    %c0_i32_1 = arith.constant 0 : i32
    return %c0_i32, %c0_i32_0 : i32, i32
  }
  func.func @transform_4(%arg0: i32) -> (i32, i32) {
    %c0_i32 = arith.constant 0 : i32
    %c0_i32_0 = arith.constant 0 : i32
    %c0_i32_1 = arith.constant 0 : i32
    return %c0_i32, %c0_i32_0 : i32, i32
  }
  func.func @transform_5(%arg0: i32) -> (i32, i32) {
    %c0_i32 = arith.constant 0 : i32
    %c0_i32_0 = arith.constant 0 : i32
    return %arg0, %c0_i32 : i32, i32
  }
}

</mosaic_0001>

<bundles_post_ra>
// kernel: linear_qnet_forward.1
= control target key start
LH: loop header
LB: loop body
LE: loop exit
PB: predicated region body
PF: predicated region fallthrough
CT: control target
= control target key end

     0   :  { %v274_v2 = vmov 0.0|0.0   ;;  %vm275_vm0 = vmmov 0   ;;  %v276_v4 = vmov 0.0   ;;  %s347_s0 = inlined_call_operand.vmem [shape: f32[8,16], index: 0, kind: input, shape index: {}]   ;;  %s348_s1 = inlined_call_operand.vmem [shape: f32[16,32], index: 1, kind: input, shape index: {}]   ;;  %s349_s2 = inlined_call_operand.vmem [shape: f32[1,32], index: 2, kind: input, shape index: {}]   ;;  %s350_s3 = inlined_call_operand.vmem [shape: f32[32,8], index: 3, kind: input, shape index: {}]   ;;  %s351_s4 = inlined_call_operand.vmem [shape: f32[1,8], index: 4, kind: input, shape index: {}]   ;;  %s352_s5 = inlined_call_operand.hbm [shape: f32[8,8], index: 5, kind: output, shape index: {}]  }
   0x1   :  { %v22_v0 = vld [vmem:[%s348_s1] sm:$0xff]  ;;  %v23_v1 = vld [vmem:[%s348_s1 + $0x8] sm:$0xff]  ;;  %237 = vmatprep.subr.bf16.mxu0 %v274_v2  ;;  %223 = vmatprep.mubr.msk.f32.mxu0 %vm275_vm0, %v276_v4 }
   0x2   :  { %v238_v3 = vpack.c.bf16 %v23_v1, %v22_v0  ;;  %v106_v5 = vld [vmem:[%s350_s3] sm:$0xff]  ;;  %v107_v6 = vld [vmem:[%s350_s3 + $0x8] sm:$0xff]  ;;  %240 = vmatprep.subr.bf16.mxu1 %v274_v2  ;;  %234 = vmatprep.mubr.msk.f32.mxu1 %vm275_vm0, %v276_v4 }
   0x3   :  { %v241_v7 = vpack.c.bf16 %v107_v6, %v106_v5 }
   0x4   :  { %10 = vsyncpa [#allocation3], 0  ;;  %239 = vmatpush3.bf16.msra.mxu0 %v238_v3  ;;  %v21_v8 = vld [vmem:[%s347_s0] sm:$0xff]  ;;  %vm31_vm1 = vcmask 130048   ;;  %v108_v9 = vld [vmem:[%s350_s3 + $0x10] sm:$0xff]  ;;  %vm117_vm2 = vcmask 261120  }
   0x5   :  { %242 = vmatpush3.bf16.msra.mxu1 %v241_v7  ;;  %v109_v10 = vld [vmem:[%s350_s3 + $0x18] sm:$0xff]  ;;  %v207_v12 = vld [vmem:[%s349_s2] ss:$0 sm:$0xff]  ;;  %s277_s9 = smov [#allocation2]   ;;  %vm191_vm3 = vcmask 64512  }
   0x6   :  { %243 = vmatprep.subr.bf16.mxu1 %v274_v2  ;;  %v244_v11 = vpack.c.bf16 %v109_v10, %v108_v9  ;;  %v209_v17 = vld [vmem:[%s351_s4] ss:$0 sm:$0xff]  ;;  %s199_s10 = sshll.u32 %s277_s9, 4  ;;  %s200_s10 = int_to_ptr.vmem [resolvable:$true] %s199_s10 }
   0x7   :  { %224 = vmatmul.mubr.msk.f32.vlgmr.msra.gmra.mrb[0].mxu0 %vm31_vm1, %v21_v8  ;;  %s250_s3 = scalar_lea.vmem %s200_s10, 128  ;;  %p255_p1 = scmp.lt.s32.totalorder %s200_s10, %s200_s10 }
   0x8   :  { %p251_p0 = scmp.ne.s32.totalorder %s200_s10, %s250_s3  ;;  %p256_p2 = scmp.lt.s32.totalorder %s250_s3, %s250_s3 }
   0x9   :  { %245 = vmatpush3.bf16.msra.mxu1 %v244_v11 }
   0xa   :  { %p257_p3 = por %p256_p2, %p255_p1 }
   0xc   :  { %p258_p4 = pnand %p257_p3, %p251_p0 }
  0xda   :  { %v101_v13 = vpop.f32.mrb[0].mxu0 }
  0xdb   :  { %v102_v14 = vadd.f32 %v207_v12, %v101_v13  ;;  %v225_v15 = vpop.f32.mrb[1].mxu0 }
  0xdd   :  { %v105_v16 = vmax.f32 %v102_v14, 0.0 }
  0xdf   :  { %235 = vmatmul.mubr.msk.f32.vlgmr.msra.gmra.mrb[0].mxu1 %vm117_vm2, %v105_v16 }
 0x1b2   :  { %v187_v18 = vpop.f32.mrb[0].mxu1 }
 0x1b3   :  { %v188_v19 = vadd.f32 %v209_v17, %v187_v18  ;;  %v236_v20 = vpop.f32.mrb[1].mxu1 }
 0x1b5   :  { %192 = vst.msk [vmem:[#allocation2] sm:$0xff] %vm191_vm3, %v188_v19 }
 0x1b6   :  { %261 = shalt.err (!%p258_p4)
}
 0x1b7   :  { %s262_s12 = scalar_lea.hbm %s352_s5, 128 }
 0x1b8   :  { %p263_p5 = scmp.ne.s32.totalorder %s352_s5, %s262_s12  ;;  %p266_p6 = scmp.lt.u32.totalorder %s262_s12, %s352_s5 }
 0x1ba   :  { %p268_p7 = pnand %p266_p6, %p263_p5 }
 0x1bc   :  { %271 = shalt.err (!%p268_p7)
}
 0x1bd   :  { %202 = dma.vmem_to_hbm [thread:$0]  %s200_s10, 128, %s352_s5, [#allocation3]  }
 0x1be   :  { %272 = dma.done.wait [#allocation3], 128  }
 0x1bf   :  { %273 = vsyncadd [#allocation3], 4294967168 }
 0x1c0   :  { %206 = vsyncpa [#allocation3], 1 }

</bundles_post_ra>
